<compile_context>
chip_gen: v6e
topology: v6e:2x2x1
jax: 0.10.0
libtpu: 0.0.40
codegen_flags: <defaults>
</compile_context>

<pallas_src>
import functools

import jax
import jax.numpy as jnp
from jax import lax
from jax.experimental import pallas as pl
from jax.experimental.pallas import tpu as pltpu

_OUT_LANES = 128   # one full vreg row -> single unmasked vst + one tiny output DMA
_NUM_CORES = 2     # v7x has 2 TensorCores; elsewhere this is just a serial split


def _round_up(x, m):
    return -(-x // m) * m


def att_loss_kernel(temperature, batch_size, tile_b, inner_steps,
                    labels_ref, logits_ref, att_ref, out_ref):
    """One grid step == TB batch elements.

    labels_ref : (TB, 1, 1) int32
    logits_ref : (TB, C, S) input dtype, native (batch, class, student) layout
    att_ref    : (TB, S, S)
    out_ref    : (1, 1, 128) f32 per-core partial accumulator, resident across the
                 inner ("arbitrary") axis; lanes 0/1/2 hold the un-normalized
                 loss_true / loss_att / dist_att^2 partial sums.
    """
    core = pl.program_id(0)
    step = pl.program_id(1)

    TB, C, S = logits_ref.shape

    x = logits_ref[...].astype(jnp.float32)        # (TB, C, S)  in-kernel cast
    att = att_ref[...].astype(jnp.float32)         # (TB, S, S)
    labels = labels_ref[...]                       # (TB, 1, 1)  int32

    # True (unclamped) batch offset of this tile; masks the ragged tail and the
    # fully-out-of-range steps whose blocks are clamped re-reads.
    b0 = (core * inner_steps + step) * tile_b
    valid = (b0 + lax.broadcasted_iota(jnp.int32, (TB, 1, 1), 0)) < batch_size

    # Identity over the student axis: reused for the MXU layout transpose and for
    # the ||att - I||_F term.
    eye = (lax.broadcasted_iota(jnp.int32, (TB, S, S), 1)
           == lax.broadcasted_iota(jnp.int32, (TB, S, S), 2)).astype(jnp.float32)

    # Batched contractions over the last dim of both operands ('bts,bcs->btc').
    dn = (((2,), (2,)), ((0,), (0,)))
    # Class axis -> lanes: logits_t[b, s, c] = x[b, c, s]   (MXU "transpose")
    logits_t = lax.dot_general(eye, x, dn, preferred_element_type=jnp.float32)
    # attention_label (transposed layout): al[b, t, c] = sum_s att[b,t,s] x[b,c,s]
    att_lab = lax.dot_general(att, x, dn, preferred_element_type=jnp.float32)

    # ---- log-softmax over classes (lane axis)
    m = jnp.max(logits_t, axis=-1, keepdims=True)                 # (TB, S, 1)
    z = logits_t - m
    lse = jnp.log(jnp.sum(jnp.exp(z), axis=-1, keepdims=True))    # (TB, S, 1)

    # ---- loss_true: sum_{b,s} -logp[b, s, label_b]  (no one-hot, no full logp)
    cls = lax.broadcasted_iota(jnp.int32, (TB, S, C), 2)
    z_lab = jnp.sum(jnp.where(cls == labels, z, 0.0), axis=-1, keepdims=True)
    ce_part = jnp.sum(jnp.where(valid, lse - z_lab, 0.0))

    # ---- temperature-scaled log-softmax (reuse the row max: max(x/T) == max(x)/T)
    if temperature == 1.0:
        lp_t = z - lse
        al = att_lab
    else:
        inv_t = jnp.float32(1.0 / temperature)
        z_t = z * inv_t
        lp_t = z_t - jnp.log(jnp.sum(jnp.exp(z_t), axis=-1, keepdims=True))
        al = att_lab * inv_t

    # ---- softmax over classes of attention_label / T (exact divide: memory-bound)
    m_a = jnp.max(al, axis=-1, keepdims=True)
    e_a = jnp.exp(al - m_a)
    sm = e_a / jnp.sum(e_a, axis=-1, keepdims=True)
    att_part = jnp.sum(jnp.where(valid, lp_t * sm, 0.0))

    # ---- ||att - I||_F^2 contribution
    diff = att - eye
    fro_part = jnp.sum(jnp.where(valid, diff * diff, 0.0))

    lane = lax.broadcasted_iota(jnp.int32, (1, 1, _OUT_LANES), 2)
    contrib = jnp.where(lane == 0, ce_part,
              jnp.where(lane == 1, att_part,
              jnp.where(lane == 2, fro_part, jnp.float32(0.0))))

    @pl.when(step == 0)
    def _init():
        out_ref[...] = jnp.zeros_like(out_ref)

    out_ref[...] = out_ref[...] + contrib


def _pick_tile_and_vmem(B, C, S, in_itemsize):
    """Pick the batch tile TB and an explicit VMEM limit from device capacity."""
    try:
        info = pltpu.get_tpu_info()
        cap = int(getattr(info, "vmem_capacity_bytes", 0))
    except Exception:               # off-device tracing / older API
        cap = 0
    if cap <= 0:
        cap = 64 * 1024 * 1024      # conservative: v7x physical VMEM per TC
    vmem_limit = min(int(cap * 3 // 4), 100 * 1024 * 1024)

    # Per-batch-element VMEM cost with (8, 128) tile padding:
    #   double-buffered input tiles + ~8 lane-dense f32 temporaries + a few (S,S).
    logits_tile = _round_up(C, 8) * _round_up(S, 128) * in_itemsize
    att_tile = _round_up(S, 8) * _round_up(S, 128) * in_itemsize
    dense_tmp = _round_up(S, 8) * _round_up(C, 128) * 4
    small_tmp = _round_up(S, 8) * _round_up(S, 128) * 4
    per_elem = 2 * (logits_tile + att_tile) + 8 * dense_tmp + 3 * small_tmp

    budget = vmem_limit // 2
    tb = max(1, min(B, budget // per_elem, 512))
    return int(tb), int(vmem_limit)


def att_loss_pallas(output_batch, labels, attention, temperature=1.0, tile_b=None):
    """output_batch: (B, C, S), labels: (B,) int, attention: (B, S, S).

    Returns (loss_true, loss_att, dist_att) matching Att_Loss(loss='CE').forward.
    """
    B, C, S = output_batch.shape
    labels3 = labels.astype(jnp.int32).reshape(B, 1, 1)

    tb_auto, vmem_limit = _pick_tile_and_vmem(B, C, S, output_batch.dtype.itemsize)
    tb = int(tile_b) if tile_b is not None else tb_auto
    tb = max(1, min(tb, B))

    nblk = pl.cdiv(B, tb)
    ncores = _NUM_CORES if nblk >= 2 else 1
    nsteps = pl.cdiv(nblk, ncores)

    def _blk(c, s):
        # Clamp so over-provisioned (core, step) pairs re-read the last block;
        # their contribution is masked in-kernel via the unclamped batch offset.
        return jnp.minimum(c * nsteps + s, nblk - 1)

    kernel = functools.partial(att_loss_kernel, float(temperature), B, tb, nsteps)

    out = pl.pallas_call(
        kernel,
        out_shape=jax.ShapeDtypeStruct((ncores, 1, _OUT_LANES), jnp.float32),
        grid_spec=pltpu.PrefetchScalarGridSpec(
            num_scalar_prefetch=0,
            grid=(ncores, nsteps),
            in_specs=[
                pl.BlockSpec((tb, 1, 1), lambda c, s: (_blk(c, s), 0, 0)),
                pl.BlockSpec((tb, C, S), lambda c, s: (_blk(c, s), 0, 0)),
                pl.BlockSpec((tb, S, S), lambda c, s: (_blk(c, s), 0, 0)),
            ],
            out_specs=pl.BlockSpec((1, 1, _OUT_LANES), lambda c, s: (c, 0, 0)),
        ),
        compiler_params=pltpu.CompilerParams(
            dimension_semantics=("parallel", "arbitrary"),
            vmem_limit_bytes=vmem_limit,
        ),
    )(labels3, output_batch, attention)

    # Finalize in the wrapper (partials span cores): three scalar ops.
    acc = jnp.sum(out[:, 0, :], axis=0)        # (128,)
    loss_true = acc[0] / B
    loss_att = -acc[1] / B
    dist_att = jnp.sqrt(acc[2] / (B * S))
    return loss_true, loss_att, dist_att


def att_loss_ref(output_batch, labels, attention, temperature=1.0):
    """Pure-JAX reference mirroring the PyTorch forward (loss='CE')."""
    B, C, S = output_batch.shape
    onehot = jax.nn.one_hot(labels, C, dtype=jnp.float32)
    logp = jax.nn.log_softmax(output_batch, axis=1)
    loss_true = jnp.sum(-jnp.sum(onehot[:, :, None] * logp, axis=1)) / B
    att_label = jnp.einsum('bcs,bts->bct', output_batch, attention)
    lp_t = jax.nn.log_softmax(output_batch / temperature, axis=1)
    sm = jax.nn.softmax(att_label / temperature, axis=1)
    loss_att = -jnp.sum(lp_t * sm) / B
    eye = jnp.eye(S, dtype=jnp.float32)[None]
    dist_att = jnp.sqrt(jnp.sum((attention - eye) ** 2)) / jnp.sqrt(jnp.float32(B * S))
    return loss_true, loss_att, dist_att


if __name__ == "__main__":
    key = jax.random.PRNGKey(0)
    k1, k2, k3 = jax.random.split(key, 3)

    # Small shapes consistent with the module: batch=2, num_classes=16, num_student=8.
    B, C, S = 2, 16, 8
    output_batch = jax.random.normal(k1, (B, C, S), dtype=jnp.float32)
    labels = jax.random.randint(k2, (B,), 0, C, dtype=jnp.int32)
    attention = jax.random.normal(k3, (B, S, S), dtype=jnp.float32)

    # Tolerance covers the MXU's default f32 precision (bf16 passes) in the
    # in-kernel layout transpose and attention_label matmuls.
    tol = dict(rtol=1e-2, atol=1e-2)

    for T in (1.0, 2.0):
        res = att_loss_pallas(output_batch, labels, attention, temperature=T)
        jax.block_until_ready(res)
        ref = att_loss_ref(output_batch, labels, attention, T)
        for got, want in zip(res, ref):
            assert jnp.allclose(got, want, **tol), (T, got, want)

    # Ragged batch: exercises the multi-block grid, the 2-core split, the clamped
    # index_map, and tail masking (B % tile_b != 0).
    B2 = 19
    k4, k5, k6 = jax.random.split(jax.random.PRNGKey(1), 3)
    ob2 = jax.random.normal(k4, (B2, C, S), dtype=jnp.float32)
    lb2 = jax.random.randint(k5, (B2,), 0, C, dtype=jnp.int32)
    at2 = jax.random.normal(k6, (B2, S, S), dtype=jnp.float32)
    res2 = att_loss_pallas(ob2, lb2, at2, temperature=2.0, tile_b=4)
    jax.block_until_ready(res2)
    ref2 = att_loss_ref(ob2, lb2, at2, 2.0)
    for got, want in zip(res2, ref2):
        assert jnp.allclose(got, want, **tol), (got, want)

    print("KERNEL_OK")
</pallas_src>

<mosaic_0001>
module attributes {stable_mosaic.version = 11 : i64} {
  func.func @att_loss_kernel(%arg0: i32, %arg1: i32, %arg2: memref<2x1x1xi32, #tpu.memory_space<vmem>>, %arg3: memref<2x16x8xf32, #tpu.memory_space<vmem>>, %arg4: memref<2x8x8xf32, #tpu.memory_space<vmem>>, %arg5: memref<1x1x128xf32, #tpu.memory_space<vmem>>) attributes {dimension_semantics = [#tpu.dimension_semantics<parallel>, #tpu.dimension_semantics<arbitrary>], iteration_bounds = array<i64: 1, 1>, scalar_prefetch = 0 : i64, scratch_operands = 0 : i64, tpu.core_type = #tpu.core_type<tc>, window_params = [{transform_indices = @transform_0, window_bounds = array<i64: 2, 1, 1>}, {transform_indices = @transform_1, window_bounds = array<i64: 2, 16, 8>}, {transform_indices = @transform_2, window_bounds = array<i64: 2, 8, 8>}, {transform_indices = @transform_3, window_bounds = array<i64: 1, 1, 128>}]} {
    %c0 = arith.constant 0 : index
    %c0_0 = arith.constant 0 : index
    %c0_1 = arith.constant 0 : index
    %0 = vector.load %arg3[%c0, %c0_0, %c0_1] : memref<2x16x8xf32, #tpu.memory_space<vmem>>, vector<2x16x8xf32>
    %c0_2 = arith.constant 0 : index
    %c0_3 = arith.constant 0 : index
    %c0_4 = arith.constant 0 : index
    %1 = vector.load %arg4[%c0_2, %c0_3, %c0_4] : memref<2x8x8xf32, #tpu.memory_space<vmem>>, vector<2x8x8xf32>
    %c0_5 = arith.constant 0 : index
    %c0_6 = arith.constant 0 : index
    %c0_7 = arith.constant 0 : index
    %2 = vector.load %arg2[%c0_5, %c0_6, %c0_7] : memref<2x1x1xi32, #tpu.memory_space<vmem>>, vector<2x1x1xi32>
    %c1_i32 = arith.constant 1 : i32
    %3 = arith.muli %arg0, %c1_i32 : i32
    %4 = arith.addi %3, %arg1 : i32
    %c2_i32 = arith.constant 2 : i32
    %5 = arith.muli %4, %c2_i32 : i32
    %6 = tpu.iota {dimensions = array<i32: 0>} : vector<2x1x1xi32>
    %7 = vector.broadcast %5 : i32 to vector<2x1x1xi32>
    %8 = arith.addi %7, %6 : vector<2x1x1xi32>
    %c2_i32_8 = arith.constant 2 : i32
    %9 = vector.broadcast %c2_i32_8 : i32 to vector<2x1x1xi32>
    %10 = arith.cmpi slt, %8, %9 : vector<2x1x1xi32>
    %11 = tpu.iota {dimensions = array<i32: 1>} : vector<2x8x8xi32>
    %12 = tpu.iota {dimensions = array<i32: 2>} : vector<2x8x8xi32>
    %13 = arith.cmpi eq, %11, %12 : vector<2x8x8xi32>
    %14 = arith.extui %13 : vector<2x8x8xi1> to vector<2x8x8xi32>
    %15 = arith.sitofp %14 : vector<2x8x8xi32> to vector<2x8x8xf32>
    %cst = arith.constant dense<0.000000e+00> : vector<2x8x16xf32>
    %16 = tpu.matmul %15, %0, %cst {dimension_numbers = #tpu.dot_dimension_numbers<[2], [2], [1], [1], [0, 0, 0, 1, 1, 1], [0], [0]>} : vector<2x8x8xf32>, vector<2x16x8xf32>, vector<2x8x16xf32> -> vector<2x8x16xf32>
    %cst_9 = arith.constant dense<0.000000e+00> : vector<2x8x16xf32>
    %17 = tpu.matmul %1, %0, %cst_9 {dimension_numbers = #tpu.dot_dimension_numbers<[2], [2], [1], [1], [0, 0, 0, 1, 1, 1], [0], [0]>} : vector<2x8x8xf32>, vector<2x16x8xf32>, vector<2x8x16xf32> -> vector<2x8x16xf32>
    %cst_10 = arith.constant dense<0xFF800000> : vector<2x8xf32>
    %18 = vector.multi_reduction <maximumf>, %16, %cst_10 [2] : vector<2x8x16xf32> to vector<2x8xf32>
    %19 = vector.shape_cast %18 : vector<2x8xf32> to vector<2x8x1xf32>
    %20 = vector.broadcast %19 : vector<2x8x1xf32> to vector<2x8x16xf32>
    %21 = arith.subf %16, %20 : vector<2x8x16xf32>
    %22 = math.exp %21 : vector<2x8x16xf32>
    %cst_11 = arith.constant dense<0.000000e+00> : vector<2x8xf32>
    %23 = vector.multi_reduction <add>, %22, %cst_11 [2] : vector<2x8x16xf32> to vector<2x8xf32>
    %24 = vector.shape_cast %23 : vector<2x8xf32> to vector<2x8x1xf32>
    %25 = math.log %24 : vector<2x8x1xf32>
    %26 = tpu.iota {dimensions = array<i32: 2>} : vector<2x8x16xi32>
    %27 = vector.broadcast %2 : vector<2x1x1xi32> to vector<2x8x16xi32>
    %28 = arith.cmpi eq, %26, %27 : vector<2x8x16xi32>
    %cst_12 = arith.constant 0.000000e+00 : f32
    %29 = vector.broadcast %cst_12 : f32 to vector<2x8x16xf32>
    %30 = arith.select %28, %21, %29 : vector<2x8x16xi1>, vector<2x8x16xf32>
    %cst_13 = arith.constant dense<0.000000e+00> : vector<2x8xf32>
    %31 = vector.multi_reduction <add>, %30, %cst_13 [2] : vector<2x8x16xf32> to vector<2x8xf32>
    %32 = vector.shape_cast %31 : vector<2x8xf32> to vector<2x8x1xf32>
    %33 = arith.subf %25, %32 : vector<2x8x1xf32>
    %cst_14 = arith.constant 0.000000e+00 : f32
    %34 = vector.shape_cast %10 : vector<2x1x1xi1> to vector<2x1x1xi1>
    %35 = vector.broadcast %34 : vector<2x1x1xi1> to vector<2x8x1xi1>
    %36 = vector.broadcast %cst_14 : f32 to vector<2x8x1xf32>
    %37 = arith.select %35, %33, %36 : vector<2x8x1xi1>, vector<2x8x1xf32>
    %38 = vector.shape_cast %37 : vector<2x8x1xf32> to vector<1x2x8x1xf32>
    %cst_15 = arith.constant dense<0.000000e+00> : vector<1xf32>
    %39 = vector.multi_reduction <add>, %38, %cst_15 [1, 2, 3] : vector<1x2x8x1xf32> to vector<1xf32>
    %40 = vector.shape_cast %39 : vector<1xf32> to vector<1x1x1x1xf32>
    %41 = vector.extract %40[0, 0, 0, 0] : f32 from vector<1x1x1x1xf32>
    %42 = vector.broadcast %25 : vector<2x8x1xf32> to vector<2x8x16xf32>
    %43 = arith.subf %21, %42 : vector<2x8x16xf32>
    %cst_16 = arith.constant dense<0xFF800000> : vector<2x8xf32>
    %44 = vector.multi_reduction <maximumf>, %17, %cst_16 [2] : vector<2x8x16xf32> to vector<2x8xf32>
    %45 = vector.shape_cast %44 : vector<2x8xf32> to vector<2x8x1xf32>
    %46 = vector.broadcast %45 : vector<2x8x1xf32> to vector<2x8x16xf32>
    %47 = arith.subf %17, %46 : vector<2x8x16xf32>
    %48 = math.exp %47 : vector<2x8x16xf32>
    %cst_17 = arith.constant dense<0.000000e+00> : vector<2x8xf32>
    %49 = vector.multi_reduction <add>, %48, %cst_17 [2] : vector<2x8x16xf32> to vector<2x8xf32>
    %50 = vector.shape_cast %49 : vector<2x8xf32> to vector<2x8x1xf32>
    %51 = vector.broadcast %50 : vector<2x8x1xf32> to vector<2x8x16xf32>
    %52 = arith.divf %48, %51 : vector<2x8x16xf32>
    %53 = arith.mulf %43, %52 : vector<2x8x16xf32>
    %cst_18 = arith.constant 0.000000e+00 : f32
    %54 = vector.shape_cast %10 : vector<2x1x1xi1> to vector<2x1x1xi1>
    %55 = vector.broadcast %54 : vector<2x1x1xi1> to vector<2x8x16xi1>
    %56 = vector.broadcast %cst_18 : f32 to vector<2x8x16xf32>
    %57 = arith.select %55, %53, %56 : vector<2x8x16xi1>, vector<2x8x16xf32>
    %58 = vector.shape_cast %57 : vector<2x8x16xf32> to vector<1x2x8x16xf32>
    %cst_19 = arith.constant dense<0.000000e+00> : vector<1xf32>
    %59 = vector.multi_reduction <add>, %58, %cst_19 [1, 2, 3] : vector<1x2x8x16xf32> to vector<1xf32>
    %60 = vector.shape_cast %59 : vector<1xf32> to vector<1x1x1x1xf32>
    %61 = vector.extract %60[0, 0, 0, 0] : f32 from vector<1x1x1x1xf32>
    %62 = arith.subf %1, %15 : vector<2x8x8xf32>
    %63 = arith.mulf %62, %62 : vector<2x8x8xf32>
    %cst_20 = arith.constant 0.000000e+00 : f32
    %64 = vector.shape_cast %10 : vector<2x1x1xi1> to vector<2x1x1xi1>
    %65 = vector.broadcast %64 : vector<2x1x1xi1> to vector<2x8x8xi1>
    %66 = vector.broadcast %cst_20 : f32 to vector<2x8x8xf32>
    %67 = arith.select %65, %63, %66 : vector<2x8x8xi1>, vector<2x8x8xf32>
    %68 = vector.shape_cast %67 : vector<2x8x8xf32> to vector<1x2x8x8xf32>
    %cst_21 = arith.constant dense<0.000000e+00> : vector<1xf32>
    %69 = vector.multi_reduction <add>, %68, %cst_21 [1, 2, 3] : vector<1x2x8x8xf32> to vector<1xf32>
    %70 = vector.shape_cast %69 : vector<1xf32> to vector<1x1x1x1xf32>
    %71 = vector.extract %70[0, 0, 0, 0] : f32 from vector<1x1x1x1xf32>
    %72 = tpu.iota {dimensions = array<i32: 2>} : vector<1x1x128xi32>
    %c0_i32 = arith.constant 0 : i32
    %73 = vector.broadcast %c0_i32 : i32 to vector<1x1x128xi32>
    %74 = arith.cmpi eq, %72, %73 : vector<1x1x128xi32>
    %c1_i32_22 = arith.constant 1 : i32
    %75 = vector.broadcast %c1_i32_22 : i32 to vector<1x1x128xi32>
    %76 = arith.cmpi eq, %72, %75 : vector<1x1x128xi32>
    %c2_i32_23 = arith.constant 2 : i32
    %77 = vector.broadcast %c2_i32_23 : i32 to vector<1x1x128xi32>
    %78 = arith.cmpi eq, %72, %77 : vector<1x1x128xi32>
    %cst_24 = arith.constant 0.000000e+00 : f32
    %79 = vector.broadcast %71 : f32 to vector<1x1x128xf32>
    %80 = vector.broadcast %cst_24 : f32 to vector<1x1x128xf32>
    %81 = arith.select %78, %79, %80 : vector<1x1x128xi1>, vector<1x1x128xf32>
    %82 = vector.broadcast %61 : f32 to vector<1x1x128xf32>
    %83 = arith.select %76, %82, %81 : vector<1x1x128xi1>, vector<1x1x128xf32>
    %84 = vector.broadcast %41 : f32 to vector<1x1x128xf32>
    %85 = arith.select %74, %84, %83 : vector<1x1x128xi1>, vector<1x1x128xf32>
    %c0_i32_25 = arith.constant 0 : i32
    %86 = arith.cmpi eq, %arg1, %c0_i32_25 : i32
    %87 = arith.extui %86 : i1 to i32
    %c0_i32_26 = arith.constant 0 : i32
    %88 = arith.cmpi ne, %87, %c0_i32_26 : i32
    scf.if %88 {
      %cst_33 = arith.constant 0.000000e+00 : f32
      %92 = vector.broadcast %cst_33 : f32 to vector<1x1x128xf32>
      %c0_34 = arith.constant 0 : index
      %c0_35 = arith.constant 0 : index
      %c0_36 = arith.constant 0 : index
      %93 = vector.load %arg5[%c0_34, %c0_35, %c0_36] : memref<1x1x128xf32, #tpu.memory_space<vmem>>, vector<1x1x128xf32>
      tpu.vector_store %arg5[%c0_34, %c0_35, %c0_36], %92 {strides = array<i32>} : memref<1x1x128xf32, #tpu.memory_space<vmem>>, vector<1x1x128xf32>,
    } else {
    }
    %c0_27 = arith.constant 0 : index
    %c0_28 = arith.constant 0 : index
    %c0_29 = arith.constant 0 : index
    %89 = vector.load %arg5[%c0_27, %c0_28, %c0_29] : memref<1x1x128xf32, #tpu.memory_space<vmem>>, vector<1x1x128xf32>
    %90 = arith.addf %89, %85 : vector<1x1x128xf32>
    %c0_30 = arith.constant 0 : index
    %c0_31 = arith.constant 0 : index
    %c0_32 = arith.constant 0 : index
    %91 = vector.load %arg5[%c0_30, %c0_31, %c0_32] : memref<1x1x128xf32, #tpu.memory_space<vmem>>, vector<1x1x128xf32>
    tpu.vector_store %arg5[%c0_30, %c0_31, %c0_32], %90 {strides = array<i32>} : memref<1x1x128xf32, #tpu.memory_space<vmem>>, vector<1x1x128xf32>,
    return
  }
  func.func @transform_0(%arg0: i32, %arg1: i32) -> (i32, i32, i32) {
    %c1_i32 = arith.constant 1 : i32
    %0 = arith.muli %arg0, %c1_i32 : i32
    %1 = arith.addi %0, %arg1 : i32
    %c0_i32 = arith.constant 0 : i32
    %2 = arith.minsi %1, %c0_i32 : i32
    %c0_i32_0 = arith.constant 0 : i32
    %c0_i32_1 = arith.constant 0 : i32
    %c0_i32_2 = arith.constant 0 : i32
    return %2, %c0_i32_0, %c0_i32_1 : i32, i32, i32
  }
  func.func @transform_1(%arg0: i32, %arg1: i32) -> (i32, i32, i32) {
    %c1_i32 = arith.constant 1 : i32
    %0 = arith.muli %arg0, %c1_i32 : i32
    %1 = arith.addi %0, %arg1 : i32
    %c0_i32 = arith.constant 0 : i32
    %2 = arith.minsi %1, %c0_i32 : i32
    %c0_i32_0 = arith.constant 0 : i32
    %c0_i32_1 = arith.constant 0 : i32
    %c0_i32_2 = arith.constant 0 : i32
    return %2, %c0_i32_0, %c0_i32_1 : i32, i32, i32
  }
  func.func @transform_2(%arg0: i32, %arg1: i32) -> (i32, i32, i32) {
    %c1_i32 = arith.constant 1 : i32
    %0 = arith.muli %arg0, %c1_i32 : i32
    %1 = arith.addi %0, %arg1 : i32
    %c0_i32 = arith.constant 0 : i32
    %2 = arith.minsi %1, %c0_i32 : i32
    %c0_i32_0 = arith.constant 0 : i32
    %c0_i32_1 = arith.constant 0 : i32
    %c0_i32_2 = arith.constant 0 : i32
    return %2, %c0_i32_0, %c0_i32_1 : i32, i32, i32
  }
  func.func @transform_3(%arg0: i32, %arg1: i32) -> (i32, i32, i32) {
    %c0_i32 = arith.constant 0 : i32
    %c0_i32_0 = arith.constant 0 : i32
    %c0_i32_1 = arith.constant 0 : i32
    return %arg0, %c0_i32, %c0_i32_0 : i32, i32, i32
  }
}

</mosaic_0001>

<bundles_post_ra>
// kernel: tpu_custom_call.1
= control target key start
LH: loop header
LB: loop body
LE: loop exit
PB: predicated region body
PF: predicated region fallthrough
CT: control target
= control target key end

     0   :  { %vm132_vm0 = vcmask 64512   ;;  %v125_v2 = vlaneseq  ;;  %v711_v3 = vmov 0.0   ;;  %s824_s0 = inlined_call_operand.vmem [shape: s32[2,1,1], index: 0, kind: input, shape index: {}]   ;;  %s825_s1 = inlined_call_operand.vmem [shape: f32[2,16,8], index: 1, kind: input, shape index: {}]   ;;  %s826_s2 = inlined_call_operand.vmem [shape: f32[2,8,8], index: 2, kind: input, shape index: {}]   ;;  %s827_s3 = inlined_call_operand.hbm [shape: f32[1,1,128], index: 3, kind: output, shape index: {}]  }
   0x1   :  { %v112_v0 = vld [vmem:[%s825_s1 + $0x8] sm:$0xff]  ;;  %v114_v1 = vld [vmem:[%s825_s1 + $0x18] sm:$0xff]  ;;  %633 = vmatprep.subr.mxu0 %v711_v3  ;;  %573 = vst [vmem:[#allocation2] sm:$0x1] %v711_v3  ;;  %640 = vmatprep.subr.mxu1 %v711_v3 }
   0x2   :  { %634 = vmatpush3.xpose.msk.msra.mxu0 %vm132_vm0, %v112_v0  ;;  %641 = vmatpush3.xpose.msk.msra.mxu1 %vm132_vm0, %v114_v1  ;;  %v126_v4 = vshrl.u32 %v125_v2, 7  ;;  %v743_v5 = vand.u32 127, %v125_v2 }
   0x3   :  { %8 = vsyncpa [#allocation3], 0  ;;  %635 = vmatprep.subr.mxu0 %v711_v3  ;;  %v111_v6 = vld [vmem:[%s825_s1] sm:$0xff]  ;;  %642 = vmatprep.subr.mxu1 %v711_v3  ;;  %v113_v7 = vld [vmem:[%s825_s1 + $0x10] sm:$0xff]  ;;  %vm712_vm1 = vmmov 0   ;;  %v713_v11 = vmov 0  }
   0x4   :  { %637 = vmatprep.mubr.msk.f32.mxu0 %vm712_vm1, %v711_v3  ;;  %vm129_vm2 = vcmp.eq.s32.totalorder %v126_v4, %v743_v5  ;;  %644 = vmatprep.mubr.msk.f32.mxu1 %vm712_vm1, %v711_v3  ;;  %v771_v9 = vld [vmem:[%s826_s2] sm:$0xff]  ;;  %v776_v10 = vld [vmem:[%s826_s2 + $0x8] sm:$0xff]  ;;  %vm434_vm3 = vcmask 130048   ;;  %vm489_vm6 = vcmask 7168   ;;  %vm562_vm7 = vcmp.eq.s32.totalorder %v743_v5, 2  ;;  %s714_s28 = smov [#allocation2]  }
   0x5   :  { %v756_v8 = vsel %vm129_vm2, 1.0, %v711_v3  ;;  %671 = vset.pattern.permute.xlu0 %v713_v11  ;;  %672 = vset.pattern.permute.xlu1 %v713_v11  ;;  %v619_v24 = vld [vmem:[%s824_s0] ss:$0 sm:$0xff]  ;;  %v620_v25 = vld [vmem:[%s824_s0 + $0x1] ss:$0 sm:$0xff]  ;;  %vm561_vm8 = vcmp.eq.s32.totalorder %v743_v5, 1 }
   0x6   :  { %636 = vmatpush3.xpose.msk.msra.mxu0 %vm132_vm0, %v111_v6  ;;  %643 = vmatpush3.xpose.msk.msra.mxu1 %vm132_vm0, %v113_v7  ;;  %v542_v52 = vsub.f32 %v771_v9, %v756_v8  ;;  %v543_v53 = vsub.f32 %v776_v10, %v756_v8  ;;  %vm560_vm9 = vcmp.eq.s32.totalorder %v743_v5, 0  ;;  %s583_s29 = sshll.u32 %s714_s28, 4  ;;  %s584_s29 = int_to_ptr.vmem [resolvable:$true] %s583_s29 }
   0x7   :  { %647 = vmatprep.subr.mxu0 %v711_v3  ;;  %654 = vmatprep.subr.mxu1 %v711_v3  ;;  %s689_s30 = scalar_lea.vmem %s584_s29, 16  ;;  %s693_s4 = scalar_lea.vmem %s584_s29, 32 }
   0x8   :  { %v544_v54 = vmul.f32 %v542_v52, %v542_v52  ;;  %v545_v55 = vmul.f32 %v543_v53, %v543_v53  ;;  %p690_p0 = scmp.ne.s32.totalorder %s584_s29, %s689_s30  ;;  %p694_p1 = scmp.lt.s32.totalorder %s584_s29, %s584_s29 }
   0x9   :  { %638 = vmatmul.mubr.msk.f32.vlgmr.msra.gmra.mxu0 %vm132_vm0, %v756_v8  ;;  %645 = vmatmul.mubr.msk.f32.vlgmr.msra.gmra.mxu1 %vm132_vm0, %v756_v8  ;;  %p695_p2 = scmp.lt.s32.totalorder %s693_s4, %s689_s30 }
   0xa   :  { %648 = vmatpush3.xpose.msk.msra.mxu0 %vm132_vm0, %v112_v0  ;;  %655 = vmatpush3.xpose.msk.msra.mxu1 %vm132_vm0, %v114_v1  ;;  %v548_v56 = vsel %vm132_vm0, %v544_v54, 0.0  ;;  %v549_v57 = vsel %vm132_vm0, %v545_v55, 0.0 }
   0xb   :  { %649 = vmatprep.subr.mxu0 %v711_v3  ;;  %656 = vmatprep.subr.mxu1 %v711_v3  ;;  %v550_v58 = vadd.f32 %v549_v57, %v548_v56  ;;  %p696_p3 = por %p695_p2, %p694_p1 }
   0xc   :  { %651 = vmatprep.mubr.msk.f32.mxu0 %vm712_vm1, %v711_v3  ;;  %658 = vmatprep.mubr.msk.f32.mxu1 %vm712_vm1, %v711_v3 }
   0xd   :  { %p697_p4 = pnand %p696_p3, %p690_p0 }
   0xe   :  { %650 = vmatpush3.xpose.msk.msra.mxu0 %vm132_vm0, %v111_v6  ;;  %657 = vmatpush3.xpose.msk.msra.mxu1 %vm132_vm0, %v113_v7 }
  0x11   :  { %652 = vmatmul.mubr.msk.f32.vlgmr.msra.gmra.mxu0 %vm132_vm0, %v771_v9  ;;  %659 = vmatmul.mubr.msk.f32.vlgmr.msra.gmra.mxu1 %vm132_vm0, %v776_v10 }
  0xc9   :  { %v208_v12 = vpop.f32.mrf.mxu0  ;;  %v284_v13 = vpop.f32.mrf.mxu1 }
  0xca   :  { %v435_v14 = vsel %vm434_vm3, %v208_v12, -inf  ;;  %v438_v17 = vsel %vm434_vm3, %v284_v13, -inf }
  0xcb   :  { %436 = vmax.xlane.f32.xlu0 %v435_v14  ;;  %v639_v15 = vpop.f32.mrf.mxu0  ;;  %v646_v16 = vpop.f32.mrf.mxu1 }
  0xcf   :  { %439 = vmax.xlane.f32.xlu0 %v438_v17 }
  0xd1   :  { %v357_v18 = vpop.f32.mrf.mxu0  ;;  %v430_v19 = vpop.f32.mrf.mxu1 }
  0xd2   :  { %v504_v20 = vsel %vm434_vm3, %v357_v18, -inf  ;;  %v507_v23 = vsel %vm434_vm3, %v430_v19, -inf }
  0xd3   :  { %505 = vmax.xlane.f32.xlu1 %v504_v20  ;;  %v653_v21 = vpop.f32.mrf.mxu0  ;;  %v660_v22 = vpop.f32.mrf.mxu1 }
  0xd7   :  { %508 = vmax.xlane.f32.xlu1 %v507_v23 }
  0xe5   :  { %466 = vperm.xlu0 %671, %v619_v24  }
  0xe8   :  { %469 = vperm.xlu1 %672, %v620_v25  }
 0x154   :  { %v437_v26 = vpop.xlane.xlu0 %436 }
 0x155   :  { %v792_v27 = vsub.f32 %v208_v12, %v437_v26 }
 0x157   :  { %v443_v28 = vmul.f32 1.442695, %v792_v27 }
 0x158   :  { %v440_v29 = vpop.xlane.xlu0 %439 }
 0x159   :  { %673 = vpow2.f32 %v443_v28  ;;  %v795_v30 = vsub.f32 %v284_v13, %v440_v29 }
 0x15b   :  { %v445_v31 = vmul.f32 1.442695, %v795_v30 }
 0x15c   :  { %v506_v32 = vpop.xlane.xlu1 %505 }
 0x15d   :  { %675 = vpow2.f32 %v445_v31  ;;  %v510_v33 = vsub.f32 %v357_v18, %v506_v32 }
 0x15f   :  { %v512_v34 = vmul.f32 1.442695, %v510_v33 }
 0x160   :  { %v509_v35 = vpop.xlane.xlu1 %508  ;;  %v467_v43 = vpop.permute.xlu0 %466 }
 0x161   :  { %677 = vpow2.f32 %v512_v34  ;;  %v511_v36 = vsub.f32 %v430_v19, %v509_v35  ;;  %vm471_vm4 = vcmp.eq.s32.totalorder %v743_v5, %v467_v43 }
 0x162   :  { %v473_v48 = vsel %vm471_vm4, %v792_v27, 0.0 }
 0x163   :  { %v514_v37 = vmul.f32 1.442695, %v511_v36  ;;  %v475_v49 = vsel %vm434_vm3, %v473_v48, 0.0 }
 0x164   :  { %v470_v46 = vpop.permute.xlu1 %469 }
 0x165   :  { %679 = vpow2.f32 %v514_v37  ;;  %vm472_vm5 = vcmp.eq.s32.totalorder %v743_v5, %v470_v46  ;;  %v574_v46 = vld [vmem:[#allocation2] sm:$0x1] }
 0x166   :  { %v674_v38 = vpop.eup %673  ;;  %v474_v50 = vsel %vm472_vm5, %v795_v30, 0.0 }
 0x167   :  { %v447_v39 = vsel %vm434_vm3, %v674_v38, 0.0  ;;  %v478_v51 = vsel %vm434_vm3, %v474_v50, 0.0 }
 0x168   :  { %448 = vadd.xlane.f32.xlu1 %v447_v39 }
 0x16a   :  { %v676_v40 = vpop.eup %675 }
 0x16b   :  { %v450_v41 = vsel %vm434_vm3, %v676_v40, 0.0 }
 0x16c   :  { %451 = vadd.xlane.f32.xlu0 %v450_v41 }
 0x16e   :  { %v678_v42 = vpop.eup %677 }
 0x16f   :  { %v516_v44 = vsel %vm434_vm3, %v678_v42, 0.0 }
 0x170   :  { %517 = vadd.xlane.f32.xlu1 %v516_v44  ;;  %551 = vadd.xlane.f32.xlu0 %v550_v58 }
 0x172   :  { %v680_v45 = vpop.eup %679 }
 0x173   :  { %v519_v47 = vsel %vm434_vm3, %v680_v45, 0.0 }
 0x174   :  { %520 = vadd.xlane.f32.xlu1 %v519_v47 }
 0x178   :  { %476 = vadd.xlane.f32.xlu1 %v475_v49 }
 0x17c   :  { %479 = vadd.xlane.f32.xlu1 %v478_v51 }
 0x1f1   :  { %v449_v59 = vpop.xlane.xlu1 %448 }
 0x1f2   :  { %681 = vlog2.f32 %v449_v59 }
 0x1f5   :  { %v452_v60 = vpop.xlane.xlu0 %451 }
 0x1f6   :  { %683 = vlog2.f32 %v452_v60 }
 0x1f9   :  { %v518_v61 = vpop.xlane.xlu1 %517  ;;  %v552_v22 = vpop.xlane.xlu0 %551 }
 0x1fa   :  { %685 = vrcp.f32 %v518_v61  ;;  %v553_v24 = vrot.slane %v552_v22, 4 }
 0x1fc   :  { %v554_v28 = vadd.f32 %v553_v24, %v552_v22 }
 0x1fd   :  { %v521_v62 = vpop.xlane.xlu1 %520 }
 0x1fe   :  { %687 = vrcp.f32 %v521_v62  ;;  %v555_v31 = vrot.slane %v554_v28, 2 }
 0x1ff   :  { %v682_v63 = vpop.eup %681 }
 0x200   :  { %v454_v0 = vmul.f32 0.6931472, %v682_v63  ;;  %v556_v36 = vadd.f32 %v555_v31, %v554_v28 }
 0x201   :  { %v477_v1 = vpop.xlane.xlu1 %476 }
 0x202   :  { %v481_v3 = vsub.f32 %v454_v0, %v477_v1  ;;  %v502_v13 = vsub.f32 %v792_v27, %v454_v0  ;;  %v557_v39 = vrot.slane %v556_v36, 1 }
 0x203   :  { %v684_v2 = vpop.eup %683 }
 0x204   :  { %v456_v4 = vmul.f32 0.6931472, %v684_v2  ;;  %v490_v9 = vsel %vm489_vm6, %v481_v3, 0.0 }
 0x205   :  { %v480_v6 = vpop.xlane.xlu1 %479 }
 0x206   :  { %v482_v7 = vsub.f32 %v456_v4, %v480_v6  ;;  %v503_v15 = vsub.f32 %v795_v30, %v456_v4 }
 0x207   :  { %v686_v8 = vpop.eup %685 }
 0x208   :  { %v491_v10 = vsel %vm489_vm6, %v482_v7, 0.0  ;;  %v523_v11 = vmul.f32 %v686_v8, %v678_v42  ;;  %v558_v42 = vadd.f32 %v557_v39, %v556_v36 }
 0x209   :  { %v492_v12 = vadd.f32 %v491_v10, %v490_v9 }
 0x20a   :  { %v526_v17 = vmul.f32 %v523_v11, %v502_v13 }
 0x20b   :  { %v688_v14 = vpop.eup %687  ;;  %493 = vadd.xlane.f32.xlu1 %v492_v12 }
 0x20c   :  { %v525_v16 = vmul.f32 %v688_v14, %v680_v45  ;;  %v530_v19 = vsel %vm434_vm3, %v526_v17, 0.0 }
 0x20e   :  { %v527_v18 = vmul.f32 %v525_v16, %v503_v15 }
 0x210   :  { %v531_v20 = vsel %vm434_vm3, %v527_v18, 0.0 }
 0x211   :  { %v532_v21 = vadd.f32 %v531_v20, %v530_v19 }
 0x213   :  { %533 = vadd.xlane.f32.xlu1 %v532_v21 }
 0x294   :  { %v494_v23 = vpop.xlane.xlu1 %493 }
 0x295   :  { %v495_v25 = vrot.slane %v494_v23, 4 }
 0x297   :  { %v496_v26 = vadd.f32 %v495_v25, %v494_v23 }
 0x299   :  { %v497_v27 = vrot.slane %v496_v26, 2 }
 0x29b   :  { %v498_v29 = vadd.f32 %v497_v27, %v496_v26 }
 0x29c   :  { %v534_v32 = vpop.xlane.xlu1 %533 }
 0x29d   :  { %v535_v30 = vrot.slane %v534_v32, 4  ;;  %v499_v33 = vrot.slane %v498_v29, 1 }
 0x29f   :  { %v536_v34 = vadd.f32 %v535_v30, %v534_v32  ;;  %v500_v35 = vadd.f32 %v499_v33, %v498_v29 }
 0x2a1   :  { %v537_v37 = vrot.slane %v536_v34, 2  ;;  %661 = vpush %v500_v35 }
 0x2a3   :  { %v538_v38 = vadd.f32 %v537_v37, %v536_v34 }
 0x2a5   :  { %v539_v40 = vrot.slane %v538_v38, 1 }
 0x2a7   :  { %v540_v41 = vadd.f32 %v539_v40, %v538_v38 }
 0x2a9   :  { %663 = vpush %v540_v41 }
 0x2aa   :  { %665 = vpush %v558_v42 }
 0x2d2   :  { %s662_s0 = spop %661 }
 0x2d3   :  { %v567_v47 = vstv %s662_s0 }
 0x2da   :  { %s664_s26 = spop %663 }
 0x2db   :  { %v565_v43 = vstv %s664_s26  ;;  %s666_s27 = spop %665 }
 0x2dc   :  { %v563_v44 = vstv %s666_s27 }
 0x2dd   :  { %v564_v45 = vsel %vm562_vm7, %v563_v44, 0.0 }
 0x2de   :  { %v566_v48 = vsel %vm561_vm8, %v565_v43, %v564_v45 }
 0x2df   :  { %v568_v49 = vsel %vm560_vm9, %v567_v47, %v566_v48 }
 0x2e0   :  { %v575_v50 = vadd.f32 %v574_v46, %v568_v49 }
 0x2e2   :  { %576 = vst [vmem:[#allocation2] sm:$0x1] %v575_v50 }
 0x2e3   :  { %700 = shalt.err (!%p697_p4)
}
 0x2e4   :  { %586 = dma.vmem_to_hbm [thread:$0]  %s584_s29, 16, %s827_s3, [#allocation3]  }
 0x2e5   :  { %709 = dma.done.wait [#allocation3], 16  }
 0x2e6   :  { %710 = vsyncadd [#allocation3], 4294967280 }
 0x2e7   :  { %590 = vsyncpa [#allocation3], 1 }

</bundles_post_ra>
